<compile_context>
chip_gen: v5e
topology: v5e:2x2
jax: 0.10.0
libtpu: 0.0.40
codegen_flags: <defaults>
</compile_context>

<pallas_src>
import jax
import jax.numpy as jnp
from jax.experimental import pallas as pl
from jax.experimental.pallas import tpu as pltpu


def _round_up(x, m):
    return ((x + m - 1) // m) * m


# ---------------------------------------------------------------------------
# Kernels
# ---------------------------------------------------------------------------
def _wn_kernel_single(x_ref, v_ref, s_ref, b_ref, o_ref):
    """Whole K in one block: matmul + fused norm/scale/bias, no scratch."""
    v32 = v_ref[...].astype(jnp.float32)
    col_sq = jnp.sum(v32 * v32, axis=0, keepdims=True)           # (1, tn) XLU
    xv = jnp.dot(x_ref[...], v_ref[...],
                 preferred_element_type=jnp.float32)              # MXU, f32 acc
    scale = s_ref[...] * jax.lax.rsqrt(col_sq)                    # s / ||v||
    o_ref[...] = (xv * scale + b_ref[...]).astype(o_ref.dtype)


def _wn_kernel_tiled(x_ref, v_ref, s_ref, b_ref, o_ref, nrm_ref):
    """K tiled: accumulate the matmul into o_ref (f32, resident across k) and
    the column norm into a (1, tn) f32 scratch; epilogue on the last k step."""
    k = pl.program_id(2)

    @pl.when(k == 0)
    def _():
        o_ref[...] = jnp.zeros_like(o_ref)
        nrm_ref[...] = jnp.zeros_like(nrm_ref)

    v32 = v_ref[...].astype(jnp.float32)
    nrm_ref[...] += jnp.sum(v32 * v32, axis=0, keepdims=True)
    o_ref[...] += jnp.dot(x_ref[...], v_ref[...],
                          preferred_element_type=jnp.float32)

    @pl.when(k == pl.num_programs(2) - 1)
    def _():
        # NOTE: padded (all-zero) columns give rsqrt(0)=inf -> NaN, but those
        # columns are sliced off in the wrapper; real zero columns match torch
        # (division by zero norm).
        scale = s_ref[...] * jax.lax.rsqrt(nrm_ref[...])
        o_ref[...] = o_ref[...] * scale + b_ref[...]


# ---------------------------------------------------------------------------
# Wrapper
# ---------------------------------------------------------------------------
def weightnorm_forward(x, v, s, b, *, compute_dtype=jnp.bfloat16,
                       tm=256, tn=256, tk=2048):
    """x: (batch, ...) flattened to (batch, in_size); v: (in, out); s, b: (1, out)."""
    batch = x.shape[0]
    x2d = x.reshape(batch, -1).astype(compute_dtype)
    in_size, out_size = v.shape
    assert x2d.shape[1] == in_size
    vc = v.astype(compute_dtype)
    s2 = s.astype(jnp.float32).reshape(1, out_size)
    b2 = b.astype(jnp.float32).reshape(1, out_size)

    # ---- Tile choice: full-dim blocks (no padding) whenever a dim fits. ----
    if batch <= tm:
        tm_, M = batch, batch
    else:
        tm_ = _round_up(min(tm, batch), 16)        # bf16: 2 rows per sublane
        M = _round_up(batch, tm_)
    if out_size <= tn:
        tn_, N = out_size, out_size
    else:
        tn_ = tn                                    # 256-multiple: fills MXU cols
        N = _round_up(out_size, tn_)
    if in_size <= tk:
        tk_, K = in_size, in_size
    else:
        tk_ = tk                                    # 256-multiple
        K = _round_up(in_size, tk_)

    # ---- Ragged-edge padding only when a dim is actually tiled. -----------
    # (In a real model, pad v / s / b once at parameter-init time, not here.)
    if M != batch or K != in_size:
        x2d = jnp.pad(x2d, ((0, M - batch), (0, K - in_size)))
    if K != in_size or N != out_size:
        vc = jnp.pad(vc, ((0, K - in_size), (0, N - out_size)))
    if N != out_size:
        s2 = jnp.pad(s2, ((0, 0), (0, N - out_size)))
        b2 = jnp.pad(b2, ((0, 0), (0, N - out_size)))

    gm, gn, gk = M // tm_, N // tn_, K // tk_

    itemsize = x2d.dtype.itemsize
    cost = pl.CostEstimate(
        flops=2 * M * N * K + 2 * K * N,            # matmul + column norm
        transcendentals=N,                           # rsqrt per column
        bytes_accessed=(M * K + K * N) * itemsize + (M * N + 2 * N) * 4)

    # Double-buffered bf16 inputs + resident f32 output block (+ headroom).
    vmem_est = 2 * (tm_ * tk_ + tk_ * tn_) * itemsize + 3 * tm_ * tn_ * 4
    extra = {}
    if vmem_est > 12 * 1024 * 1024:                  # v5e scoped default 16 MiB
        extra["vmem_limit_bytes"] = min(int(2 * vmem_est), 48 * 1024 * 1024)

    if gk == 1:
        # Single-K fast path: one DMA + one MXU burst, no scratch/init/finalize.
        out = pl.pallas_call(
            _wn_kernel_single,
            out_shape=jax.ShapeDtypeStruct((M, N), jnp.float32),
            grid=(gm, gn),
            in_specs=[
                pl.BlockSpec((tm_, tk_), lambda i, j: (i, 0)),   # x tile
                pl.BlockSpec((tk_, tn_), lambda i, j: (0, j)),   # v tile
                pl.BlockSpec((1, tn_), lambda i, j: (0, j)),     # s
                pl.BlockSpec((1, tn_), lambda i, j: (0, j)),     # b
            ],
            out_specs=pl.BlockSpec((tm_, tn_), lambda i, j: (i, j)),
            compiler_params=pltpu.CompilerParams(
                dimension_semantics=("parallel", "parallel"), **extra),
            cost_estimate=cost,
        )(x2d, vc, s2, b2)
    else:
        out = pl.pallas_call(
            _wn_kernel_tiled,
            out_shape=jax.ShapeDtypeStruct((M, N), jnp.float32),
            grid=(gm, gn, gk),
            in_specs=[
                pl.BlockSpec((tm_, tk_), lambda i, j, k: (i, k)),  # x tile
                pl.BlockSpec((tk_, tn_), lambda i, j, k: (k, j)),  # v tile
                pl.BlockSpec((1, tn_), lambda i, j, k: (0, j)),    # s
                pl.BlockSpec((1, tn_), lambda i, j, k: (0, j)),    # b
            ],
            out_specs=pl.BlockSpec((tm_, tn_), lambda i, j, k: (i, j)),
            scratch_shapes=[pltpu.VMEM((1, tn_), jnp.float32)],    # col norm acc
            compiler_params=pltpu.CompilerParams(
                dimension_semantics=("parallel", "parallel", "arbitrary"),
                **extra),
            cost_estimate=cost,
        )(x2d, vc, s2, b2)

    if M != batch or N != out_size:
        out = out[:batch, :out_size]
    return out


if __name__ == "__main__":
    # Module config: WeightNorm(in_size=C*H*W, out_size=64, xavier=True)
    # applied to an NCHW input that forward() flattens to (N, C*H*W).
    N_, C, H, W = 2, 4, 16, 16
    in_size = C * H * W          # 1024
    out_size = 64
    batch = N_

    key = jax.random.PRNGKey(0)
    kx, kv = jax.random.split(key)

    # Matrix: randn(in, out) * std (std=1.0)
    v = jax.random.normal(kv, (in_size, out_size), dtype=jnp.float32)
    # Scale: xavier -> 2 / in_size
    s = jnp.full((1, out_size), 2.0 / in_size, dtype=jnp.float32)
    # Bias: 0.1
    b = jnp.full((1, out_size), 0.1, dtype=jnp.float32)

    # Input: NCHW, flattened to (batch, in_size) by the wrapper (view(-1, ...)).
    x = jax.random.normal(kx, (N_, C, H, W), dtype=jnp.float32)

    out = weightnorm_forward(x, v, s, b)
    out = jax.block_until_ready(out)

    # Reference in plain f32 JAX (kernel uses bf16 operands -> loose tolerance).
    x2d = x.reshape(batch, -1)
    ref = (x2d @ v) / jnp.sqrt(jnp.sum(v * v, axis=0, keepdims=True)) * s + b
    assert out.shape == ref.shape
    assert jnp.allclose(out, ref, atol=1e-2, rtol=1e-2), "mismatch vs reference"

    print("KERNEL_OK")
</pallas_src>

<mosaic_0001>
module attributes {stable_mosaic.version = 11 : i64} {
  func.func @_wn_kernel_single(%arg0: i32, %arg1: i32, %arg2: memref<2x1024xbf16, #tpu.memory_space<vmem>>, %arg3: memref<1024x64xbf16, #tpu.memory_space<vmem>>, %arg4: memref<1x64xf32, #tpu.memory_space<vmem>>, %arg5: memref<1x64xf32, #tpu.memory_space<vmem>>, %arg6: memref<2x64xf32, #tpu.memory_space<vmem>>) attributes {dimension_semantics = [#tpu.dimension_semantics<parallel>, #tpu.dimension_semantics<parallel>], iteration_bounds = array<i64: 1, 1>, scalar_prefetch = 0 : i64, scratch_operands = 0 : i64, tpu.core_type = #tpu.core_type<tc>, window_params = [{transform_indices = @transform_0, window_bounds = array<i64: 2, 1024>}, {transform_indices = @transform_1, window_bounds = array<i64: 1024, 64>}, {transform_indices = @transform_2, window_bounds = array<i64: 1, 64>}, {transform_indices = @transform_3, window_bounds = array<i64: 1, 64>}, {transform_indices = @transform_4, window_bounds = array<i64: 2, 64>}]} {
    %c0 = arith.constant 0 : index
    %c0_0 = arith.constant 0 : index
    %0 = vector.load %arg3[%c0, %c0_0] : memref<1024x64xbf16, #tpu.memory_space<vmem>>, vector<1024x64xbf16>
    %1 = arith.extf %0 : vector<1024x64xbf16> to vector<1024x64xf32>
    %2 = arith.mulf %1, %1 : vector<1024x64xf32>
    %cst = arith.constant dense<0.000000e+00> : vector<64xf32>
    %3 = vector.multi_reduction <add>, %2, %cst [0] : vector<1024x64xf32> to vector<64xf32>
    %4 = vector.shape_cast %3 : vector<64xf32> to vector<1x64xf32>
    %c0_1 = arith.constant 0 : index
    %c0_2 = arith.constant 0 : index
    %5 = vector.load %arg2[%c0_1, %c0_2] : memref<2x1024xbf16, #tpu.memory_space<vmem>>, vector<2x1024xbf16>
    %c0_3 = arith.constant 0 : index
    %c0_4 = arith.constant 0 : index
    %6 = vector.load %arg3[%c0_3, %c0_4] : memref<1024x64xbf16, #tpu.memory_space<vmem>>, vector<1024x64xbf16>
    %cst_5 = arith.constant dense<0.000000e+00> : vector<2x64xf32>
    %7 = tpu.matmul %5, %6, %cst_5 {dimension_numbers = #tpu.dot_dimension_numbers<[1], [0], [0], [1], [0, 0, 1, 1], [], []>} : vector<2x1024xbf16>, vector<1024x64xbf16>, vector<2x64xf32> -> vector<2x64xf32>
    %c0_6 = arith.constant 0 : index
    %c0_7 = arith.constant 0 : index
    %8 = vector.load %arg4[%c0_6, %c0_7] : memref<1x64xf32, #tpu.memory_space<vmem>>, vector<1x64xf32>
    %9 = math.rsqrt %4 : vector<1x64xf32>
    %10 = arith.mulf %8, %9 : vector<1x64xf32>
    %11 = vector.broadcast %10 : vector<1x64xf32> to vector<2x64xf32>
    %12 = arith.mulf %7, %11 : vector<2x64xf32>
    %c0_8 = arith.constant 0 : index
    %c0_9 = arith.constant 0 : index
    %13 = vector.load %arg5[%c0_8, %c0_9] : memref<1x64xf32, #tpu.memory_space<vmem>>, vector<1x64xf32>
    %14 = vector.broadcast %13 : vector<1x64xf32> to vector<2x64xf32>
    %15 = arith.addf %12, %14 : vector<2x64xf32>
    %c0_10 = arith.constant 0 : index
    %c0_11 = arith.constant 0 : index
    %16 = vector.load %arg6[%c0_10, %c0_11] : memref<2x64xf32, #tpu.memory_space<vmem>>, vector<2x64xf32>
    tpu.vector_store %arg6[%c0_10, %c0_11], %15 {strides = array<i32>} : memref<2x64xf32, #tpu.memory_space<vmem>>, vector<2x64xf32>,
    return
  }
  func.func @transform_0(%arg0: i32, %arg1: i32) -> (i32, i32) {
    %c0_i32 = arith.constant 0 : i32
    %c0_i32_0 = arith.constant 0 : i32
    return %arg0, %c0_i32 : i32, i32
  }
  func.func @transform_1(%arg0: i32, %arg1: i32) -> (i32, i32) {
    %c0_i32 = arith.constant 0 : i32
    %c0_i32_0 = arith.constant 0 : i32
    return %c0_i32, %arg1 : i32, i32
  }
  func.func @transform_2(%arg0: i32, %arg1: i32) -> (i32, i32) {
    %c0_i32 = arith.constant 0 : i32
    %c0_i32_0 = arith.constant 0 : i32
    return %c0_i32, %arg1 : i32, i32
  }
  func.func @transform_3(%arg0: i32, %arg1: i32) -> (i32, i32) {
    %c0_i32 = arith.constant 0 : i32
    %c0_i32_0 = arith.constant 0 : i32
    return %c0_i32, %arg1 : i32, i32
  }
  func.func @transform_4(%arg0: i32, %arg1: i32) -> (i32, i32) {
    %c0_i32 = arith.constant 0 : i32
    return %arg0, %arg1 : i32, i32
  }
}

</mosaic_0001>

<bundles_post_ra>
// kernel: tpu_custom_call.1
= control target key start
LH: loop header
LB: loop body
LE: loop exit
PB: predicated region body
PF: predicated region fallthrough
CT: control target
= control target key end

     0   :  { %vm402_vm0 = vcmask 523264   ;;  %s2113_s0 = inlined_call_operand.vmem [shape: bf16[2,1024], index: 0, kind: input, shape index: {}]   ;;  %s2114_s1 = inlined_call_operand.vmem [shape: bf16[1024,64], index: 1, kind: input, shape index: {}]   ;;  %s2115_s2 = inlined_call_operand.vmem [shape: f32[1,64], index: 2, kind: input, shape index: {}]   ;;  %s2116_s3 = inlined_call_operand.vmem [shape: f32[1,64], index: 3, kind: input, shape index: {}]   ;;  %s2117_s4 = inlined_call_operand.hbm [shape: f32[2,64], index: 4, kind: output, shape index: {}]  }
   0x1   :  { %v1489_v0 = vld [vmem:[%s2114_s1 + $0xb8] sm:$0xff]  ;;  %v1488_v4 = vld [vmem:[%s2114_s1 + $0xb0] sm:$0xff]  ;;  %v1487_v8 = vld [vmem:[%s2114_s1 + $0xa8] sm:$0xff] }
   0x2   :  { %v1473_v1 = vld [vmem:[%s2114_s1 + $0x38] sm:$0xff]  ;;  %1093 = vmatpush.bf16.msra.mxu2 %v1489_v0  ;;  %v1472_v5 = vld [vmem:[%s2114_s1 + $0x30] sm:$0xff]  ;;  %v1471_v9 = vld [vmem:[%s2114_s1 + $0x28] sm:$0xff] }
   0x3   :  { %v1497_v2 = vld [vmem:[%s2114_s1 + $0xf8] sm:$0xff]  ;;  %1067 = vmatpush.bf16.msra.mxu0 %v1473_v1  ;;  %v1496_v6 = vld [vmem:[%s2114_s1 + $0xf0] sm:$0xff]  ;;  %v1495_v10 = vld [vmem:[%s2114_s1 + $0xe8] sm:$0xff] }
   0x4   :  { %v1481_v3 = vld [vmem:[%s2114_s1 + $0x78] sm:$0xff]  ;;  %1106 = vmatpush.bf16.msra.mxu3 %v1497_v2  ;;  %v1480_v7 = vld [vmem:[%s2114_s1 + $0x70] sm:$0xff]  ;;  %v1479_v11 = vld [vmem:[%s2114_s1 + $0x68] sm:$0xff] }
   0x5   :  { %1080 = vmatpush.bf16.msra.mxu1 %v1481_v3  ;;  %v1486_v12 = vld [vmem:[%s2114_s1 + $0xa0] sm:$0xff]  ;;  %v1485_v16 = vld [vmem:[%s2114_s1 + $0x98] sm:$0xff]  ;;  %v1484_v21 = vld [vmem:[%s2114_s1 + $0x90] sm:$0xff] }
   0x6   :  { %1094 = vmatpush.bf16.msra.mxu2 %v1488_v4  ;;  %v1470_v13 = vld [vmem:[%s2114_s1 + $0x20] sm:$0xff]  ;;  %v1469_v17 = vld [vmem:[%s2114_s1 + $0x18] sm:$0xff]  ;;  %v1468_v22 = vld [vmem:[%s2114_s1 + $0x10] sm:$0xff] }
   0x7   :  { %1068 = vmatpush.bf16.msra.mxu0 %v1472_v5  ;;  %v1494_v14 = vld [vmem:[%s2114_s1 + $0xe0] sm:$0xff]  ;;  %v1493_v18 = vld [vmem:[%s2114_s1 + $0xd8] sm:$0xff]  ;;  %v1492_v24 = vld [vmem:[%s2114_s1 + $0xd0] sm:$0xff] }
   0x8   :  { %1107 = vmatpush.bf16.msra.mxu3 %v1496_v6  ;;  %v1478_v15 = vld [vmem:[%s2114_s1 + $0x60] sm:$0xff]  ;;  %v1477_v19 = vld [vmem:[%s2114_s1 + $0x58] sm:$0xff]  ;;  %v1476_v25 = vld [vmem:[%s2114_s1 + $0x50] sm:$0xff] }
   0x9   :  { %1081 = vmatpush.bf16.msra.mxu1 %v1480_v7  ;;  %v664_v20 = vld [vmem:[%s2113_s0] sm:$0xff]  ;;  %v20_v26 = vld [vmem:[%s2114_s1 + $0x8] sm:$0xff]   ;;  %v22_v34 = vld [vmem:[%s2114_s1 + $0x10] sm:$0xff]  }
   0xa   :  { %1095 = vmatpush.bf16.msra.mxu2 %v1487_v8  ;;  %666 = vst [vmem:[#allocation1] ss:$9 sm:$0xff] %v664_v20  ;;  %v18_v23 = vld [vmem:[%s2114_s1] sm:$0xff]   ;;  %v1483_v28 = vld [vmem:[%s2114_s1 + $0x88] sm:$0xff]  ;;  %v148_v31 = vunpack.c.l.bf16 %v20_v26  ;;  %v149_v35 = vunpack.c.h.bf16 %v20_v26  ;;  %v150_v39 = vunpack.c.l.bf16 %v22_v34 }
   0xb   :  { %1069 = vmatpush.bf16.msra.mxu0 %v1471_v9  ;;  %v146_v27 = vunpack.c.l.bf16 %v18_v23  ;;  %v1467_v29 = vld [vmem:[%s2114_s1 + $0x8] sm:$0xff]  ;;  %v147_v30 = vunpack.c.h.bf16 %v18_v23  ;;  %v1482_v37 = vld [vmem:[%s2114_s1 + $0x80] sm:$0xff] }
   0xc   :  { %1108 = vmatpush.bf16.msra.mxu3 %v1495_v10  ;;  %v1491_v32 = vld [vmem:[%s2114_s1 + $0xc8] sm:$0xff]  ;;  %v1466_v38 = vld [vmem:[%s2114_s1] sm:$0xff]  ;;  %v276_v41 = vmul.f32 %v148_v31, %v148_v31 }
   0xd   :  { %1082 = vmatpush.bf16.msra.mxu1 %v1479_v11  ;;  %v1475_v33 = vld [vmem:[%s2114_s1 + $0x48] sm:$0xff]  ;;  %v274_v36 = vmul.f32 %v146_v27, %v146_v27  ;;  %v275_v40 = vmul.f32 %v147_v30, %v147_v30 }
   0xe   :  { %1096 = vmatpush.bf16.msra.mxu2 %v1486_v12 }
   0xf   :  { %1070 = vmatpush.bf16.msra.mxu0 %v1470_v13 }
  0x10   :  { %1109 = vmatpush.bf16.msra.mxu3 %v1494_v14 }
  0x11   :  { %1083 = vmatpush.bf16.msra.mxu1 %v1478_v15 }
  0x12   :  { %1097 = vmatpush.bf16.msra.mxu2 %v1485_v16 }
  0x13   :  { %1071 = vmatpush.bf16.msra.mxu0 %v1469_v17 }
  0x14   :  { %1110 = vmatpush.bf16.msra.mxu3 %v1493_v18 }
  0x15   :  { %1084 = vmatpush.bf16.msra.mxu1 %v1477_v19 }
  0x16   :  { %1098 = vmatpush.bf16.msra.mxu2 %v1484_v21 }
  0x17   :  { %1072 = vmatpush.bf16.msra.mxu0 %v1468_v22 }
  0x18   :  { %1111 = vmatpush.bf16.msra.mxu3 %v1492_v24 }
  0x19   :  { %1085 = vmatpush.bf16.msra.mxu1 %v1476_v25 }
  0x1a   :  { %1099 = vmatpush.bf16.msra.mxu2 %v1483_v28 }
  0x1b   :  { %1073 = vmatpush.bf16.msra.mxu0 %v1467_v29 }
  0x1c   :  { %9 = vsyncpa [#allocation3], 0  ;;  %1112 = vmatpush.bf16.msra.mxu3 %v1491_v32  ;;  %v1521_v42 = vld [vmem:[%s2114_s1 + $0x1b8] sm:$0xff]  ;;  %v1490_v43 = vld [vmem:[%s2114_s1 + $0xc0] sm:$0xff]  ;;  %v151_v47 = vunpack.c.h.bf16 %v22_v34  ;;  %v277_v48 = vmul.f32 %v149_v35, %v149_v35  ;;  %v403_v50 = vsel %vm402_vm0, %v274_v36, 0.0  ;;  %v278_v54 = vmul.f32 %v150_v39, %v150_v39  ;;  %s1560_s8 = smov [#allocation2]  }
  0x1d   :  { %1086 = vmatpush.bf16.msra.mxu1 %v1475_v33  ;;  %v24_v44 = vld [vmem:[%s2114_s1 + $0x18] sm:$0xff]   ;;  %v1474_v49 = vld [vmem:[%s2114_s1 + $0x40] sm:$0xff]  ;;  %v404_v55 = vsel %vm402_vm0, %v275_v40, 0.0  ;;  %v406_v56 = vsel %vm402_vm0, %v276_v41, 0.0  ;;  %v1520_v57 = vld [vmem:[%s2114_s1 + $0x1b0] sm:$0xff]  ;;  %s1199_s9 = sshll.u32 %s1560_s8, 4  ;;  %s1200_s9 = int_to_ptr.vmem [resolvable:$true] %s1199_s9 }
  0x1e   :  { %v1505_v45 = vld [vmem:[%s2114_s1 + $0x138] sm:$0xff]  ;;  %1100 = vmatpush.bf16.msra.mxu2 %v1482_v37  ;;  %v152_v53 = vunpack.c.l.bf16 %v24_v44  ;;  %v667_v58 = vld [vmem:[#allocation1] sm:$0xff]  ;;  %v405_v60 = vadd.f32 %v404_v55, %v403_v50  ;;  %v1504_v61 = vld [vmem:[%s2114_s1 + $0x130] sm:$0xff]  ;;  %v153_v0 = vunpack.c.h.bf16 %v24_v44  ;;  %v279_v1 = vmul.f32 %v151_v47, %v151_v47  ;;  %s1201_s12 = sshll.u32 %s2117_s4, 4  ;;  %s1202_s12 = int_to_ptr.hbm [resolvable:$true] %s1201_s12 }
  0x1f   :  { %v1529_v46 = vld [vmem:[%s2114_s1 + $0x1f8] sm:$0xff]  ;;  %1074 = vmatpush.bf16.msra.mxu0 %v1466_v38  ;;  %v26_v59 = vld [vmem:[%s2114_s1 + $0x20] sm:$0xff]   ;;  %v1528_v62 = vld [vmem:[%s2114_s1 + $0x1f0] sm:$0xff]  ;;  %v408_v2 = vsel %vm402_vm0, %v277_v48, 0.0  ;;  %v410_v8 = vsel %vm402_vm0, %v278_v54, 0.0  ;;  %vm1192_vm4 = vcmask 517120  }
  0x20   :  { %v1513_v51 = vld [vmem:[%s2114_s1 + $0x178] sm:$0xff]  ;;  %1113 = vmatpush.bf16.msra.mxu3 %v1490_v43  ;;  %v407_v3 = vadd.f32 %v406_v56, %v405_v60  ;;  %v1512_v4 = vld [vmem:[%s2114_s1 + $0x170] sm:$0xff]  ;;  %v154_v6 = vunpack.c.l.bf16 %v26_v59  ;;  %v280_v7 = vmul.f32 %v152_v53, %v152_v53  ;;  %v1519_v9 = vld [vmem:[%s2114_s1 + $0x1a8] sm:$0xff]  ;;  %v155_v14 = vunpack.c.h.bf16 %v26_v59 }
  0x21   :  { %v669_v52 = vld [vmem:[#allocation1 + $0x12] sm:$0xff]  ;;  %v670_v63 = vld [vmem:[#allocation1 + $0x1b] sm:$0xff]  ;;  %1087 = vmatpush.bf16.msra.mxu1 %v1474_v49  ;;  %v668_v5 = vld [vmem:[#allocation1 + $0x9] sm:$0xff]  ;;  %v281_v15 = vmul.f32 %v153_v0, %v153_v0  ;;  %v412_v16 = vsel %vm402_vm0, %v279_v1, 0.0 }
  0x22   :  { %1145 = vmatpush.bf16.msrb.mxu2 %v1521_v42  ;;  %1075 = vmatmul.bf16.vlgmr.msra.gmra.mxu0 %v667_v58  ;;  %v28_v10 = vld [vmem:[%s2114_s1 + $0x28] sm:$0xff]   ;;  %v409_v11 = vadd.f32 %v408_v2, %v407_v3  ;;  %v282_v20 = vmul.f32 %v154_v6, %v154_v6  ;;  %v414_v21 = vsel %vm402_vm0, %v280_v7, 0.0  ;;  %v1518_v22 = vld [vmem:[%s2114_s1 + $0x1a0] sm:$0xff]  ;;  %v30_v23 = vld [vmem:[%s2114_s1 + $0x30] sm:$0xff]   ;;  %v283_v28 = vmul.f32 %v155_v14, %v155_v14 }
  0x23   :  { %1119 = vmatpush.bf16.msrb.mxu0 %v1505_v45  ;;  %1101 = vmatmul.bf16.vlgmr.msra.gmra.mxu2 %v669_v52  ;;  %v1503_v12 = vld [vmem:[%s2114_s1 + $0x128] sm:$0xff]  ;;  %v156_v19 = vunpack.c.l.bf16 %v28_v10  ;;  %v1502_v25 = vld [vmem:[%s2114_s1 + $0x120] sm:$0xff]  ;;  %v157_v27 = vunpack.c.h.bf16 %v28_v10  ;;  %v416_v29 = vsel %vm402_vm0, %v281_v15, 0.0  ;;  %v158_v32 = vunpack.c.l.bf16 %v30_v23  ;;  %v1517_v35 = vld [vmem:[%s2114_s1 + $0x198] sm:$0xff] }
  0x24   :  { %1158 = vmatpush.bf16.msrb.mxu3 %v1529_v46  ;;  %v1527_v13 = vld [vmem:[%s2114_s1 + $0x1e8] sm:$0xff]  ;;  %1088 = vmatmul.bf16.vlgmr.msra.gmra.mxu1 %v668_v5  ;;  %v411_v17 = vadd.f32 %v410_v8, %v409_v11  ;;  %v1526_v26 = vld [vmem:[%s2114_s1 + $0x1e0] sm:$0xff]  ;;  %v418_v34 = vsel %vm402_vm0, %v282_v20, 0.0  ;;  %v32_v36 = vld [vmem:[%s2114_s1 + $0x38] sm:$0xff]   ;;  %v159_v40 = vunpack.c.h.bf16 %v30_v23  ;;  %v420_v42 = vsel %vm402_vm0, %v283_v28, 0.0 }
  0x25   :  { %1132 = vmatpush.bf16.msrb.mxu1 %v1513_v51  ;;  %1114 = vmatmul.bf16.vlgmr.msra.gmra.mxu3 %v670_v63  ;;  %v1511_v18 = vld [vmem:[%s2114_s1 + $0x168] sm:$0xff]  ;;  %v1510_v31 = vld [vmem:[%s2114_s1 + $0x160] sm:$0xff]  ;;  %v284_v33 = vmul.f32 %v156_v19, %v156_v19  ;;  %v1501_v38 = vld [vmem:[%s2114_s1 + $0x118] sm:$0xff]  ;;  %v285_v41 = vmul.f32 %v157_v27, %v157_v27  ;;  %v160_v45 = vunpack.c.l.bf16 %v32_v36  ;;  %v286_v46 = vmul.f32 %v158_v32, %v158_v32 }
  0x26   :  { %1146 = vmatpush.bf16.msrb.mxu2 %v1520_v57  ;;  %v413_v24 = vadd.f32 %v412_v16, %v411_v17  ;;  %v1525_v39 = vld [vmem:[%s2114_s1 + $0x1d8] sm:$0xff]  ;;  %v1516_v48 = vld [vmem:[%s2114_s1 + $0x190] sm:$0xff]  ;;  %v34_v49 = vld [vmem:[%s2114_s1 + $0x40] sm:$0xff]   ;;  %v161_v53 = vunpack.c.h.bf16 %v32_v36  ;;  %v287_v54 = vmul.f32 %v159_v40, %v159_v40 }
  0x27   :  { %1120 = vmatpush.bf16.msrb.mxu0 %v1504_v61  ;;  %v1509_v44 = vld [vmem:[%s2114_s1 + $0x158] sm:$0xff]  ;;  %v422_v47 = vsel %vm402_vm0, %v284_v33, 0.0  ;;  %v1500_v51 = vld [vmem:[%s2114_s1 + $0x110] sm:$0xff]  ;;  %v424_v55 = vsel %vm402_vm0, %v285_v41, 0.0  ;;  %v162_v58 = vunpack.c.l.bf16 %v34_v49  ;;  %v288_v59 = vmul.f32 %v160_v45, %v160_v45  ;;  %v1515_v61 = vld [vmem:[%s2114_s1 + $0x188] sm:$0xff] }
  0x28   :  { %1159 = vmatpush.bf16.msrb.mxu3 %v1528_v62  ;;  %v415_v30 = vadd.f32 %v414_v21, %v413_v24  ;;  %v1524_v52 = vld [vmem:[%s2114_s1 + $0x1d0] sm:$0xff]  ;;  %v426_v60 = vsel %vm402_vm0, %v286_v46, 0.0  ;;  %v36_v62 = vld [vmem:[%s2114_s1 + $0x48] sm:$0xff]   ;;  %v163_v2 = vunpack.c.h.bf16 %v34_v49  ;;  %v289_v3 = vmul.f32 %v161_v53, %v161_v53  ;;  %v1514_v10 = vld [vmem:[%s2114_s1 + $0x180] sm:$0xff] }
  0x29   :  { %1133 = vmatpush.bf16.msrb.mxu1 %v1512_v4  ;;  %v1508_v57 = vld [vmem:[%s2114_s1 + $0x150] sm:$0xff]  ;;  %v1499_v0 = vld [vmem:[%s2114_s1 + $0x108] sm:$0xff]  ;;  %v428_v4 = vsel %vm402_vm0, %v287_v54, 0.0  ;;  %v164_v7 = vunpack.c.l.bf16 %v36_v62  ;;  %v290_v8 = vmul.f32 %v162_v58, %v162_v58  ;;  %v1522_v14 = vld [vmem:[%s2114_s1 + $0x1c0] sm:$0xff]  ;;  %v165_v15 = vunpack.c.h.bf16 %v36_v62 }
  0x2a   :  { %1147 = vmatpush.bf16.msrb.mxu2 %v1519_v9  ;;  %v417_v37 = vadd.f32 %v416_v29, %v415_v30  ;;  %v1523_v1 = vld [vmem:[%s2114_s1 + $0x1c8] sm:$0xff]  ;;  %v430_v9 = vsel %vm402_vm0, %v288_v59, 0.0  ;;  %v38_v11 = vld [vmem:[%s2114_s1 + $0x50] sm:$0xff]   ;;  %v291_v16 = vmul.f32 %v163_v2, %v163_v2  ;;  %v432_v17 = vsel %vm402_vm0, %v289_v3, 0.0  ;;  %v1506_v19 = vld [vmem:[%s2114_s1 + $0x140] sm:$0xff] }
  0x2b   :  { %1121 = vmatpush.bf16.msrb.mxu0 %v1503_v12  ;;  %v1507_v6 = vld [vmem:[%s2114_s1 + $0x148] sm:$0xff]  ;;  %v166_v20 = vunpack.c.l.bf16 %v38_v11  ;;  %v292_v21 = vmul.f32 %v164_v7, %v164_v7  ;;  %v673_v23 = vld [vmem:[#allocation1 + $0x36] sm:$0xff]  ;;  %v674_v27 = vld [vmem:[#allocation1 + $0x3f] sm:$0xff]  ;;  %v167_v28 = vunpack.c.h.bf16 %v38_v11  ;;  %v293_v29 = vmul.f32 %v165_v15, %v165_v15 }
  0x2c   :  { %1160 = vmatpush.bf16.msrb.mxu3 %v1527_v13  ;;  %v419_v43 = vadd.f32 %v418_v34, %v417_v37  ;;  %v1498_v13 = vld [vmem:[%s2114_s1 + $0x100] sm:$0xff]  ;;  %v40_v24 = vld [vmem:[%s2114_s1 + $0x58] sm:$0xff]   ;;  %v436_v30 = vsel %vm402_vm0, %v291_v16, 0.0  ;;  %v672_v32 = vld [vmem:[#allocation1 + $0x2d] sm:$0xff] }
  0x2d   :  { %1134 = vmatpush.bf16.msrb.mxu1 %v1511_v18  ;;  %v168_v33 = vunpack.c.l.bf16 %v40_v24  ;;  %v294_v34 = vmul.f32 %v166_v20, %v166_v20  ;;  %v42_v36 = vld [vmem:[%s2114_s1 + $0x60] sm:$0xff]   ;;  %v440_v40 = vsel %vm402_vm0, %v293_v29, 0.0  ;;  %v44_v45 = vld [vmem:[%s2114_s1 + $0x68] sm:$0xff]   ;;  %v46_v54 = vld [vmem:[%s2114_s1 + $0x70] sm:$0xff]  }
  0x2e   :  { %1148 = vmatpush.bf16.msrb.mxu2 %v1518_v22  ;;  %v421_v50 = vadd.f32 %v420_v42, %v419_v43  ;;  %v434_v22 = vsel %vm402_vm0, %v290_v8, 0.0  ;;  %v170_v42 = vunpack.c.l.bf16 %v42_v36  ;;  %v50_v8 = vld [vmem:[%s2114_s1 + $0x80] sm:$0xff]  }
  0x2f   :  { %1122 = vmatpush.bf16.msrb.mxu0 %v1502_v25  ;;  %v296_v43 = vmul.f32 %v168_v33, %v168_v33 }
  0x30   :  { %1161 = vmatpush.bf16.msrb.mxu3 %v1526_v26  ;;  %v423_v56 = vadd.f32 %v422_v47, %v421_v50  ;;  %v671_v26 = vld [vmem:[#allocation1 + $0x24] sm:$0xff]  ;;  %v171_v47 = vunpack.c.h.bf16 %v42_v36 }
  0x31   :  { %1135 = vmatpush.bf16.msrb.mxu1 %v1510_v31  ;;  %v446_v53 = vsel %vm402_vm0, %v296_v43, 0.0 }
  0x32   :  { %1149 = vmatpush.bf16.msrb.mxu2 %v1517_v35  ;;  %v425_v63 = vadd.f32 %v424_v55, %v423_v56  ;;  %v438_v35 = vsel %vm402_vm0, %v292_v21, 0.0  ;;  %v173_v56 = vunpack.c.h.bf16 %v44_v45 }
  0x33   :  { %1123 = vmatpush.bf16.msrb.mxu0 %v1501_v38  ;;  %v169_v38 = vunpack.c.h.bf16 %v40_v24 }
  0x34   :  { %1162 = vmatpush.bf16.msrb.mxu3 %v1525_v39  ;;  %v427_v5 = vadd.f32 %v426_v60, %v425_v63  ;;  %v295_v39 = vmul.f32 %v167_v28, %v167_v28  ;;  %v174_v60 = vunpack.c.l.bf16 %v46_v54  ;;  %v48_v63 = vld [vmem:[%s2114_s1 + $0x78] sm:$0xff]   ;;  %v301_v2 = vmul.f32 %v173_v56, %v173_v56 }
  0x35   :  { %1136 = vmatpush.bf16.msrb.mxu1 %v1509_v44  ;;  %v442_v44 = vsel %vm402_vm0, %v294_v34, 0.0 }
  0x36   :  { %1150 = vmatpush.bf16.msrb.mxu2 %v1516_v48  ;;  %v429_v12 = vadd.f32 %v428_v4, %v427_v5  ;;  %v297_v48 = vmul.f32 %v169_v38, %v169_v38  ;;  %v444_v49 = vsel %vm402_vm0, %v295_v39, 0.0  ;;  %v176_v5 = vunpack.c.l.bf16 %v48_v63 }
  0x37   :  { %1124 = vmatpush.bf16.msrb.mxu0 %v1500_v51  ;;  %v172_v51 = vunpack.c.l.bf16 %v44_v45 }
  0x38   :  { %1163 = vmatpush.bf16.msrb.mxu3 %v1524_v52  ;;  %v431_v18 = vadd.f32 %v430_v9, %v429_v12  ;;  %v298_v52 = vmul.f32 %v170_v42, %v170_v42  ;;  %v448_v58 = vsel %vm402_vm0, %v297_v48, 0.0  ;;  %v456_v12 = vsel %vm402_vm0, %v301_v2, 0.0 }
  0x39   :  { %1137 = vmatpush.bf16.msrb.mxu1 %v1508_v57  ;;  %v299_v57 = vmul.f32 %v171_v47, %v171_v47  ;;  %v304_v15 = vmul.f32 %v176_v5, %v176_v5 }
  0x3a   :  { %1151 = vmatpush.bf16.msrb.mxu2 %v1515_v61  ;;  %v433_v25 = vadd.f32 %v432_v17, %v431_v18  ;;  %v300_v61 = vmul.f32 %v172_v51, %v172_v51  ;;  %v450_v62 = vsel %vm402_vm0, %v298_v52, 0.0  ;;  %v52_v17 = vld [vmem:[%s2114_s1 + $0x88] sm:$0xff]  }
  0x3b   :  { %1125 = vmatpush.bf16.msrb.mxu0 %v1499_v0  ;;  %v452_v3 = vsel %vm402_vm0, %v299_v57, 0.0  ;;  %v181_v28 = vunpack.c.h.bf16 %v52_v17 }
  0x3c   :  { %1164 = vmatpush.bf16.msrb.mxu3 %v1523_v1  ;;  %v435_v31 = vadd.f32 %v434_v22, %v433_v25  ;;  %v175_v1 = vunpack.c.h.bf16 %v46_v54  ;;  %v454_v7 = vsel %vm402_vm0, %v300_v61, 0.0  ;;  %v462_v25 = vsel %vm402_vm0, %v304_v15, 0.0 }
  0x3d   :  { %1138 = vmatpush.bf16.msrb.mxu1 %v1507_v6  ;;  %v302_v6 = vmul.f32 %v174_v60, %v174_v60  ;;  %v309_v38 = vmul.f32 %v181_v28, %v181_v28 }
  0x3e   :  { %1152 = vmatpush.bf16.msrb.mxu2 %v1514_v10  ;;  %v437_v37 = vadd.f32 %v436_v30, %v435_v31  ;;  %v177_v10 = vunpack.c.h.bf16 %v48_v63  ;;  %v303_v11 = vmul.f32 %v175_v1, %v175_v1 }
  0x3f   :  { %1126 = vmatpush.bf16.msrb.mxu0 %v1498_v13  ;;  %v458_v16 = vsel %vm402_vm0, %v302_v6, 0.0  ;;  %v472_v48 = vsel %vm402_vm0, %v309_v38, 0.0 }
  0x40   :  { %1165 = vmatpush.bf16.msrb.mxu3 %v1522_v14  ;;  %v439_v41 = vadd.f32 %v438_v35, %v437_v37  ;;  %v178_v14 = vunpack.c.l.bf16 %v50_v8  ;;  %v305_v20 = vmul.f32 %v177_v10, %v177_v10  ;;  %v460_v21 = vsel %vm402_vm0, %v303_v11, 0.0  ;;  %v56_v35 = vld [vmem:[%s2114_s1 + $0x98] sm:$0xff]  }
  0x41   :  { %1153 = vmatmul.bf16.vlgmr.msrb.gmra.mxu2 %v673_v23  ;;  %1139 = vmatpush.bf16.msrb.mxu1 %v1506_v19  ;;  %v179_v19 = vunpack.c.h.bf16 %v50_v8  ;;  %v180_v23 = vunpack.c.l.bf16 %v52_v17 }
  0x42   :  { %1127 = vmatmul.bf16.vlgmr.msrb.gmra.mxu0 %v671_v26  ;;  %v441_v46 = vadd.f32 %v440_v40, %v439_v41  ;;  %v306_v24 = vmul.f32 %v178_v14, %v178_v14  ;;  %v54_v26 = vld [vmem:[%s2114_s1 + $0x90] sm:$0xff]   ;;  %v464_v30 = vsel %vm402_vm0, %v305_v20, 0.0  ;;  %v184_v41 = vunpack.c.l.bf16 %v56_v35 }
  0x43   :  { %1166 = vmatmul.bf16.vlgmr.msrb.gmra.mxu3 %v674_v27  ;;  %v307_v29 = vmul.f32 %v179_v19, %v179_v19  ;;  %v308_v33 = vmul.f32 %v180_v23, %v180_v23  ;;  %v183_v37 = vunpack.c.h.bf16 %v54_v26 }
  0x44   :  { %1140 = vmatmul.bf16.vlgmr.msrb.gmra.mxu1 %v672_v32  ;;  %v443_v50 = vadd.f32 %v442_v44, %v441_v46  ;;  %v182_v32 = vunpack.c.l.bf16 %v54_v26  ;;  %v466_v34 = vsel %vm402_vm0, %v306_v24, 0.0  ;;  %v58_v44 = vld [vmem:[%s2114_s1 + $0xa0] sm:$0xff]   ;;  %v185_v46 = vunpack.c.h.bf16 %v56_v35 }
  0x45   :  { %v468_v39 = vsel %vm402_vm0, %v307_v29, 0.0  ;;  %v470_v43 = vsel %vm402_vm0, %v308_v33, 0.0  ;;  %v311_v47 = vmul.f32 %v183_v37, %v183_v37  ;;  %v312_v51 = vmul.f32 %v184_v41, %v184_v41 }
  0x46   :  { %v445_v55 = vadd.f32 %v444_v49, %v443_v50  ;;  %v310_v42 = vmul.f32 %v182_v32, %v182_v32  ;;  %v186_v50 = vunpack.c.l.bf16 %v58_v44  ;;  %v313_v56 = vmul.f32 %v185_v46, %v185_v46 }
  0x47   :  { %v476_v57 = vsel %vm402_vm0, %v311_v47, 0.0  ;;  %v478_v61 = vsel %vm402_vm0, %v312_v51, 0.0 }
  0x48   :  { %v447_v59 = vadd.f32 %v446_v53, %v445_v55  ;;  %v474_v52 = vsel %vm402_vm0, %v310_v42, 0.0  ;;  %v60_v53 = vld [vmem:[%s2114_s1 + $0xa8] sm:$0xff]   ;;  %v187_v55 = vunpack.c.h.bf16 %v58_v44  ;;  %v314_v60 = vmul.f32 %v186_v50, %v186_v50 }
  0x49   :  { %v480_v2 = vsel %vm402_vm0, %v313_v56, 0.0 }
  0x4a   :  { %v449_v0 = vadd.f32 %v448_v58, %v447_v59  ;;  %v188_v59 = vunpack.c.l.bf16 %v60_v53  ;;  %v315_v1 = vmul.f32 %v187_v55, %v187_v55  ;;  %v482_v6 = vsel %vm402_vm0, %v314_v60, 0.0 }
  0x4c   :  { %v451_v4 = vadd.f32 %v450_v62, %v449_v0  ;;  %v62_v62 = vld [vmem:[%s2114_s1 + $0xb0] sm:$0xff]   ;;  %v189_v0 = vunpack.c.h.bf16 %v60_v53  ;;  %v316_v5 = vmul.f32 %v188_v59, %v188_v59  ;;  %v484_v11 = vsel %vm402_vm0, %v315_v1, 0.0  ;;  %v76_v1 = vld [vmem:[%s2114_s1 + $0xe8] sm:$0xff]  }
  0x4e   :  { %v453_v9 = vadd.f32 %v452_v3, %v451_v4  ;;  %v190_v4 = vunpack.c.l.bf16 %v62_v62  ;;  %v317_v10 = vmul.f32 %v189_v0, %v189_v0  ;;  %v486_v15 = vsel %vm402_vm0, %v316_v5, 0.0 }
  0x50   :  { %v455_v13 = vadd.f32 %v454_v7, %v453_v9  ;;  %v64_v7 = vld [vmem:[%s2114_s1 + $0xb8] sm:$0xff]   ;;  %v191_v9 = vunpack.c.h.bf16 %v62_v62  ;;  %v318_v14 = vmul.f32 %v190_v4, %v190_v4  ;;  %v488_v20 = vsel %vm402_vm0, %v317_v10, 0.0 }
  0x52   :  { %v457_v18 = vadd.f32 %v456_v12, %v455_v13  ;;  %v192_v13 = vunpack.c.l.bf16 %v64_v7  ;;  %v319_v19 = vmul.f32 %v191_v9, %v191_v9  ;;  %v490_v24 = vsel %vm402_vm0, %v318_v14, 0.0 }
  0x54   :  { %v459_v22 = vadd.f32 %v458_v16, %v457_v18  ;;  %v66_v16 = vld [vmem:[%s2114_s1 + $0xc0] sm:$0xff]   ;;  %v193_v18 = vunpack.c.h.bf16 %v64_v7  ;;  %v320_v23 = vmul.f32 %v192_v13, %v192_v13  ;;  %v492_v29 = vsel %vm402_vm0, %v319_v19, 0.0 }
  0x56   :  { %v461_v27 = vadd.f32 %v460_v21, %v459_v22  ;;  %v194_v22 = vunpack.c.l.bf16 %v66_v16  ;;  %v321_v28 = vmul.f32 %v193_v18, %v193_v18  ;;  %v494_v33 = vsel %vm402_vm0, %v320_v23, 0.0 }
  0x58   :  { %v463_v31 = vadd.f32 %v462_v25, %v461_v27  ;;  %v68_v25 = vld [vmem:[%s2114_s1 + $0xc8] sm:$0xff]   ;;  %v195_v27 = vunpack.c.h.bf16 %v66_v16  ;;  %v322_v32 = vmul.f32 %v194_v22, %v194_v22  ;;  %v496_v38 = vsel %vm402_vm0, %v321_v28, 0.0 }
  0x5a   :  { %v465_v36 = vadd.f32 %v464_v30, %v463_v31  ;;  %v196_v31 = vunpack.c.l.bf16 %v68_v25  ;;  %v323_v37 = vmul.f32 %v195_v27, %v195_v27  ;;  %v498_v42 = vsel %vm402_vm0, %v322_v32, 0.0 }
  0x5c   :  { %v467_v40 = vadd.f32 %v466_v34, %v465_v36  ;;  %v70_v34 = vld [vmem:[%s2114_s1 + $0xd0] sm:$0xff]   ;;  %v197_v36 = vunpack.c.h.bf16 %v68_v25  ;;  %v324_v41 = vmul.f32 %v196_v31, %v196_v31  ;;  %v500_v47 = vsel %vm402_vm0, %v323_v37, 0.0  ;;  %v80_v25 = vld [vmem:[%s2114_s1 + $0xf8] sm:$0xff]  }
  0x5d   :  { %v208_v27 = vunpack.c.l.bf16 %v80_v25  ;;  %v209_v31 = vunpack.c.h.bf16 %v80_v25  ;;  %v94_v25 = vld [vmem:[%s2114_s1 + $0x130] sm:$0xff]  }
  0x5e   :  { %v469_v45 = vadd.f32 %v468_v39, %v467_v40  ;;  %v198_v40 = vunpack.c.l.bf16 %v70_v34  ;;  %v325_v46 = vmul.f32 %v197_v36, %v197_v36  ;;  %v502_v51 = vsel %vm402_vm0, %v324_v41, 0.0 }
  0x5f   :  { %v336_v32 = vmul.f32 %v208_v27, %v208_v27 }
  0x60   :  { %v471_v49 = vadd.f32 %v470_v43, %v469_v45  ;;  %v72_v43 = vld [vmem:[%s2114_s1 + $0xd8] sm:$0xff]   ;;  %v199_v45 = vunpack.c.h.bf16 %v70_v34  ;;  %v326_v50 = vmul.f32 %v198_v40, %v198_v40  ;;  %v504_v56 = vsel %vm402_vm0, %v325_v46, 0.0  ;;  %v82_v34 = vld [vmem:[%s2114_s1 + $0x100] sm:$0xff]  }
  0x61   :  { %v210_v37 = vunpack.c.l.bf16 %v82_v34 }
  0x62   :  { %v473_v54 = vadd.f32 %v472_v48, %v471_v49  ;;  %v200_v49 = vunpack.c.l.bf16 %v72_v43  ;;  %v327_v55 = vmul.f32 %v199_v45, %v199_v45  ;;  %v506_v60 = vsel %vm402_vm0, %v326_v50, 0.0 }
  0x63   :  { %v338_v45 = vmul.f32 %v210_v37, %v210_v37 }
  0x64   :  { %v475_v58 = vadd.f32 %v474_v52, %v473_v54  ;;  %v74_v52 = vld [vmem:[%s2114_s1 + $0xe0] sm:$0xff]   ;;  %v201_v54 = vunpack.c.h.bf16 %v72_v43  ;;  %v328_v59 = vmul.f32 %v200_v49, %v200_v49  ;;  %v508_v0 = vsel %vm402_vm0, %v327_v55, 0.0 }
  0x65   :  { %v203_v62 = vunpack.c.h.bf16 %v74_v52  ;;  %v530_v55 = vsel %vm402_vm0, %v338_v45, 0.0 }
  0x66   :  { %v477_v63 = vadd.f32 %v476_v57, %v475_v58  ;;  %v202_v58 = vunpack.c.l.bf16 %v74_v52  ;;  %v510_v4 = vsel %vm402_vm0, %v328_v59, 0.0 }
  0x67   :  { %v331_v7 = vmul.f32 %v203_v62, %v203_v62 }
  0x68   :  { %v479_v3 = vadd.f32 %v478_v61, %v477_v63  ;;  %v329_v63 = vmul.f32 %v201_v54, %v201_v54 }
  0x69   :  { %v516_v14 = vsel %vm402_vm0, %v331_v7, 0.0 }
  0x6a   :  { %v481_v8 = vadd.f32 %v480_v2, %v479_v3  ;;  %v330_v3 = vmul.f32 %v202_v58, %v202_v58 }
  0x6c   :  { %v483_v12 = vadd.f32 %v482_v6, %v481_v8  ;;  %v204_v6 = vunpack.c.l.bf16 %v76_v1  ;;  %v512_v8 = vsel %vm402_vm0, %v329_v63, 0.0  ;;  %v514_v10 = vsel %vm402_vm0, %v330_v3, 0.0 }
  0x6e   :  { %v485_v17 = vadd.f32 %v484_v11, %v483_v12  ;;  %v205_v12 = vunpack.c.h.bf16 %v76_v1  ;;  %v332_v13 = vmul.f32 %v204_v6, %v204_v6  ;;  %v88_v1 = vld [vmem:[%s2114_s1 + $0x118] sm:$0xff]  }
  0x6f   :  { %v216_v6 = vunpack.c.l.bf16 %v88_v1 }
  0x70   :  { %v487_v21 = vadd.f32 %v486_v15, %v485_v17  ;;  %v78_v15 = vld [vmem:[%s2114_s1 + $0xf0] sm:$0xff]   ;;  %v333_v19 = vmul.f32 %v205_v12, %v205_v12 }
  0x71   :  { %v206_v18 = vunpack.c.l.bf16 %v78_v15  ;;  %v207_v22 = vunpack.c.h.bf16 %v78_v15 }
  0x72   :  { %v489_v26 = vadd.f32 %v488_v20, %v487_v21  ;;  %v518_v20 = vsel %vm402_vm0, %v332_v13, 0.0 }
  0x73   :  { %v334_v23 = vmul.f32 %v206_v18, %v206_v18  ;;  %v335_v28 = vmul.f32 %v207_v22, %v207_v22 }
  0x74   :  { %v491_v30 = vadd.f32 %v490_v24, %v489_v26  ;;  %v520_v24 = vsel %vm402_vm0, %v333_v19, 0.0 }
  0x76   :  { %v493_v35 = vadd.f32 %v492_v29, %v491_v30  ;;  %v522_v29 = vsel %vm402_vm0, %v334_v23, 0.0 }
  0x78   :  { %v495_v39 = vadd.f32 %v494_v33, %v493_v35  ;;  %v524_v33 = vsel %vm402_vm0, %v335_v28, 0.0 }
  0x7a   :  { %v497_v44 = vadd.f32 %v496_v38, %v495_v39  ;;  %v337_v38 = vmul.f32 %v209_v31, %v209_v31  ;;  %v526_v39 = vsel %vm402_vm0, %v336_v32, 0.0 }
  0x7c   :  { %v499_v48 = vadd.f32 %v498_v42, %v497_v44  ;;  %v211_v44 = vunpack.c.h.bf16 %v82_v34  ;;  %v528_v46 = vsel %vm402_vm0, %v337_v38, 0.0  ;;  %v222_v34 = vunpack.c.l.bf16 %v94_v25  ;;  %v96_v38 = vld [vmem:[%s2114_s1 + $0x138] sm:$0xff]  }
  0x7e   :  { %v501_v53 = vadd.f32 %v500_v47, %v499_v48  ;;  %v84_v48 = vld [vmem:[%s2114_s1 + $0x108] sm:$0xff]   ;;  %v339_v54 = vmul.f32 %v211_v44, %v211_v44 }
  0x80   :  { %v503_v57 = vadd.f32 %v502_v51, %v501_v53  ;;  %v212_v53 = vunpack.c.l.bf16 %v84_v48  ;;  %v532_v62 = vsel %vm402_vm0, %v339_v54, 0.0 }
  0x82   :  { %v505_v61 = vadd.f32 %v504_v56, %v503_v57  ;;  %v86_v57 = vld [vmem:[%s2114_s1 + $0x110] sm:$0xff]  }
  0x83   :  { %v215_v3 = vunpack.c.h.bf16 %v86_v57 }
  0x84   :  { %v507_v2 = vadd.f32 %v506_v60, %v505_v61  ;;  %v213_v60 = vunpack.c.h.bf16 %v84_v48  ;;  %v340_v61 = vmul.f32 %v212_v53, %v212_v53 }
  0x86   :  { %v509_v5 = vadd.f32 %v508_v0, %v507_v2  ;;  %v214_v0 = vunpack.c.l.bf16 %v86_v57 }
  0x88   :  { %v511_v9 = vadd.f32 %v510_v4, %v509_v5  ;;  %v341_v4 = vmul.f32 %v213_v60, %v213_v60  ;;  %v534_v5 = vsel %vm402_vm0, %v340_v61, 0.0  ;;  %v342_v7 = vmul.f32 %v214_v0, %v214_v0  ;;  %v100_v60 = vld [vmem:[%s2114_s1 + $0x148] sm:$0xff]  }
  0x8a   :  { %v513_v11 = vadd.f32 %v512_v8, %v511_v9  ;;  %v90_v8 = vld [vmem:[%s2114_s1 + $0x120] sm:$0xff]   ;;  %v536_v12 = vsel %vm402_vm0, %v341_v4, 0.0  ;;  %v538_v15 = vsel %vm402_vm0, %v342_v7, 0.0 }
  0x8b   :  { %v218_v13 = vunpack.c.l.bf16 %v90_v8  ;;  %v219_v18 = vunpack.c.h.bf16 %v90_v8  ;;  %v229_v8 = vunpack.c.h.bf16 %v100_v60 }
  0x8c   :  { %v515_v16 = vadd.f32 %v514_v10, %v513_v11  ;;  %v217_v10 = vunpack.c.h.bf16 %v88_v1  ;;  %v343_v11 = vmul.f32 %v215_v3, %v215_v3  ;;  %v228_v3 = vunpack.c.l.bf16 %v100_v60 }
  0x8d   :  { %v346_v23 = vmul.f32 %v218_v13, %v218_v13 }
  0x8e   :  { %v517_v17 = vadd.f32 %v516_v14, %v515_v16  ;;  %v344_v14 = vmul.f32 %v216_v6, %v216_v6  ;;  %v92_v16 = vld [vmem:[%s2114_s1 + $0x128] sm:$0xff]   ;;  %v345_v19 = vmul.f32 %v217_v10, %v217_v10  ;;  %v102_v6 = vld [vmem:[%s2114_s1 + $0x150] sm:$0xff]   ;;  %v356_v13 = vmul.f32 %v228_v3, %v228_v3 }
  0x8f   :  { %v220_v22 = vunpack.c.l.bf16 %v92_v16  ;;  %v221_v28 = vunpack.c.h.bf16 %v92_v16 }
  0x90   :  { %v519_v21 = vadd.f32 %v518_v20, %v517_v17  ;;  %v540_v20 = vsel %vm402_vm0, %v343_v11, 0.0 }
  0x92   :  { %v521_v26 = vadd.f32 %v520_v24, %v519_v21  ;;  %v542_v24 = vsel %vm402_vm0, %v344_v14, 0.0 }
  0x94   :  { %v523_v30 = vadd.f32 %v522_v29, %v521_v26  ;;  %v347_v29 = vmul.f32 %v219_v18, %v219_v18  ;;  %v357_v18 = vmul.f32 %v229_v8, %v229_v8 }
  0x96   :  { %v525_v36 = vadd.f32 %v524_v33, %v523_v30  ;;  %v544_v30 = vsel %vm402_vm0, %v345_v19, 0.0 }
  0x98   :  { %v527_v42 = vadd.f32 %v526_v39, %v525_v36  ;;  %v546_v36 = vsel %vm402_vm0, %v346_v23, 0.0  ;;  %v566_v23 = vsel %vm402_vm0, %v356_v13, 0.0 }
  0x9a   :  { %v529_v52 = vadd.f32 %v528_v46, %v527_v42  ;;  %v548_v42 = vsel %vm402_vm0, %v347_v29, 0.0  ;;  %v224_v46 = vunpack.c.l.bf16 %v96_v38 }
  0x9c   :  { %v531_v58 = vadd.f32 %v530_v55, %v529_v52  ;;  %v352_v57 = vmul.f32 %v224_v46, %v224_v46 }
  0x9e   :  { %v533_v2 = vadd.f32 %v532_v62, %v531_v58 }
  0x9f   :  { %v1076_v35 = vpop.f32.mrf.mxu0 }
  0xa0   :  { %v535_v9 = vadd.f32 %v534_v5, %v533_v2  ;;  %v558_v5 = vsel %vm402_vm0, %v352_v57, 0.0 }
  0xa1   :  { %v1089_v40 = vpop.f32.mrf.mxu1 }
  0xa2   :  { %v1090_v41 = vadd.f32 %v1089_v40, %v1076_v35  ;;  %v537_v17 = vadd.f32 %v536_v12, %v535_v9  ;;  %v348_v35 = vmul.f32 %v220_v22, %v220_v22  ;;  %v223_v40 = vunpack.c.h.bf16 %v94_v25 }
  0xa3   :  { %v230_v12 = vunpack.c.l.bf16 %v102_v6 }
  0xa4   :  { %v539_v21 = vadd.f32 %v538_v15, %v537_v17  ;;  %v550_v48 = vsel %vm402_vm0, %v348_v35, 0.0  ;;  %v351_v52 = vmul.f32 %v223_v40, %v223_v40  ;;  %v104_v15 = vld [vmem:[%s2114_s1 + $0x158] sm:$0xff]   ;;  %v231_v17 = vunpack.c.h.bf16 %v102_v6  ;;  %v116_v6 = vld [vmem:[%s2114_s1 + $0x188] sm:$0xff]  }
  0xa5   :  { %v358_v22 = vmul.f32 %v230_v12, %v230_v12  ;;  %v244_v12 = vunpack.c.l.bf16 %v116_v6 }
  0xa6   :  { %v1102_v43 = vpop.f32.mrf.mxu2  ;;  %v541_v26 = vadd.f32 %v540_v20, %v539_v21  ;;  %v556_v0 = vsel %vm402_vm0, %v351_v52, 0.0  ;;  %v232_v21 = vunpack.c.l.bf16 %v104_v15  ;;  %v112_v52 = vld [vmem:[%s2114_s1 + $0x178] sm:$0xff]  }
  0xa7   :  { %v1103_v47 = vadd.f32 %v1102_v43, %v1090_v41  ;;  %v1078_v51 = vpop.f32.mrf.mxu0  ;;  %v349_v41 = vmul.f32 %v221_v28, %v221_v28  ;;  %v568_v28 = vsel %vm402_vm0, %v357_v18, 0.0 }
  0xa8   :  { %v1115_v49 = vpop.f32.mrf.mxu3  ;;  %v543_v32 = vadd.f32 %v542_v24, %v541_v26  ;;  %v225_v51 = vunpack.c.h.bf16 %v96_v38  ;;  %v106_v24 = vld [vmem:[%s2114_s1 + $0x160] sm:$0xff]   ;;  %v233_v26 = vunpack.c.h.bf16 %v104_v15  ;;  %v118_v15 = vld [vmem:[%s2114_s1 + $0x190] sm:$0xff]  }
  0xa9   :  { %v1116_v50 = vadd.f32 %v1115_v49, %v1103_v47  ;;  %v1091_v56 = vpop.f32.mrf.mxu1  ;;  %v350_v47 = vmul.f32 %v222_v34, %v222_v34  ;;  %v98_v49 = vld [vmem:[%s2114_s1 + $0x140] sm:$0xff]   ;;  %v552_v53 = vsel %vm402_vm0, %v349_v41, 0.0  ;;  %v235_v35 = vunpack.c.h.bf16 %v106_v24 }
  0xaa   :  { %v545_v39 = vadd.f32 %v544_v30, %v543_v32  ;;  %v226_v56 = vunpack.c.l.bf16 %v98_v49  ;;  %v227_v62 = vunpack.c.h.bf16 %v98_v49  ;;  %v234_v30 = vunpack.c.l.bf16 %v106_v24  ;;  %v120_v24 = vld [vmem:[%s2114_s1 + $0x198] sm:$0xff]  }
  0xab   :  { %v554_v58 = vsel %vm402_vm0, %v350_v47, 0.0  ;;  %v570_v32 = vsel %vm402_vm0, %v358_v22, 0.0  ;;  %v363_v46 = vmul.f32 %v235_v35, %v235_v35  ;;  %v372_v22 = vmul.f32 %v244_v12, %v244_v12 }
  0xac   :  { %v547_v44 = vadd.f32 %v546_v36, %v545_v39  ;;  %v354_v4 = vmul.f32 %v226_v56, %v226_v56  ;;  %v355_v9 = vmul.f32 %v227_v62, %v227_v62  ;;  %v361_v36 = vmul.f32 %v233_v26, %v233_v26 }
  0xad   :  { %v362_v40 = vmul.f32 %v234_v30, %v234_v30  ;;  %v580_v56 = vsel %vm402_vm0, %v363_v46, 0.0  ;;  %v247_v26 = vunpack.c.h.bf16 %v118_v15  ;;  %v248_v30 = vunpack.c.l.bf16 %v120_v24 }
  0xae   :  { %v1104_v59 = vpop.f32.mrf.mxu2  ;;  %v562_v14 = vsel %vm402_vm0, %v354_v4, 0.0  ;;  %v564_v19 = vsel %vm402_vm0, %v355_v9, 0.0  ;;  %v576_v47 = vsel %vm402_vm0, %v361_v36, 0.0  ;;  %v249_v35 = vunpack.c.h.bf16 %v120_v24  ;;  %v134_v24 = vld [vmem:[%s2114_s1 + $0x1d0] sm:$0xff]  }
  0xaf   :  { %v375_v36 = vmul.f32 %v247_v26, %v247_v26 }
  0xb0   :  { %v1117_v63 = vpop.f32.mrf.mxu3  ;;  %v377_v46 = vmul.f32 %v249_v35, %v249_v35  ;;  %v263_v35 = vunpack.c.h.bf16 %v134_v24 }
  0xb1   :  { %v353_v63 = vmul.f32 %v225_v51, %v225_v51  ;;  %v578_v51 = vsel %vm402_vm0, %v362_v40, 0.0  ;;  %v376_v40 = vmul.f32 %v248_v30, %v248_v30  ;;  %v262_v30 = vunpack.c.l.bf16 %v134_v24 }
  0xb3   :  { %v560_v10 = vsel %vm402_vm0, %v353_v63, 0.0  ;;  %v241_v63 = vunpack.c.h.bf16 %v112_v52 }
  0xb5   :  { %v369_v9 = vmul.f32 %v241_v63, %v241_v63 }
  0xbf   :  { %v1128_v27 = vpop.f32.mrf.mxu0 }
  0xc0   :  { %v1129_v31 = vadd.f32 %v1128_v27, %v1116_v50  ;;  %v549_v50 = vadd.f32 %v548_v42, %v547_v44  ;;  %v359_v27 = vmul.f32 %v231_v17, %v231_v17  ;;  %v110_v42 = vld [vmem:[%s2114_s1 + $0x170] sm:$0xff]   ;;  %v245_v17 = vunpack.c.h.bf16 %v116_v6  ;;  %v130_v6 = vld [vmem:[%s2114_s1 + $0x1c0] sm:$0xff]  }
  0xc1   :  { %v1141_v33 = vpop.f32.mrf.mxu1  ;;  %v238_v49 = vunpack.c.l.bf16 %v110_v42  ;;  %v258_v12 = vunpack.c.l.bf16 %v130_v6 }
  0xc2   :  { %v1142_v37 = vadd.f32 %v1141_v33, %v1129_v31  ;;  %v551_v55 = vadd.f32 %v550_v48, %v549_v50  ;;  %v360_v31 = vmul.f32 %v232_v21, %v232_v21  ;;  %v108_v33 = vld [vmem:[%s2114_s1 + $0x168] sm:$0xff]   ;;  %v246_v21 = vunpack.c.l.bf16 %v118_v15 }
  0xc3   :  { %v236_v39 = vunpack.c.l.bf16 %v108_v33  ;;  %v237_v44 = vunpack.c.h.bf16 %v108_v33  ;;  %v122_v33 = vld [vmem:[%s2114_s1 + $0x1a0] sm:$0xff]   ;;  %v132_v15 = vld [vmem:[%s2114_s1 + $0x1c8] sm:$0xff]  }
  0xc4   :  { %v1154_v43 = vpop.f32.mrf.mxu2  ;;  %v553_v61 = vadd.f32 %v552_v53, %v551_v55  ;;  %v574_v41 = vsel %vm402_vm0, %v360_v31, 0.0  ;;  %v374_v31 = vmul.f32 %v246_v21, %v246_v21  ;;  %v260_v21 = vunpack.c.l.bf16 %v132_v15 }
  0xc5   :  { %v1975_v45 = vadd.f32 %v1154_v43, %v1142_v37  ;;  %v572_v37 = vsel %vm402_vm0, %v359_v27, 0.0  ;;  %v364_v50 = vmul.f32 %v236_v39, %v236_v39  ;;  %v365_v55 = vmul.f32 %v237_v44, %v237_v44 }
  0xc6   :  { %v555_v1 = vadd.f32 %v554_v58, %v553_v61  ;;  %v240_v58 = vunpack.c.l.bf16 %v112_v52  ;;  %v114_v61 = vld [vmem:[%s2114_s1 + $0x180] sm:$0xff]   ;;  %v373_v27 = vmul.f32 %v245_v17, %v245_v17  ;;  %v250_v39 = vunpack.c.l.bf16 %v122_v33  ;;  %v126_v52 = vld [vmem:[%s2114_s1 + $0x1b0] sm:$0xff]  }
  0xc7   :  { %v1130_v54 = vpop.f32.mrf.mxu0  ;;  %v582_v60 = vsel %vm402_vm0, %v364_v50, 0.0  ;;  %v242_v3 = vunpack.c.l.bf16 %v114_v61  ;;  %v243_v8 = vunpack.c.h.bf16 %v114_v61  ;;  %v251_v44 = vunpack.c.h.bf16 %v122_v33  ;;  %v128_v61 = vld [vmem:[%s2114_s1 + $0x1b8] sm:$0xff]  }
  0xc8   :  { %v557_v7 = vadd.f32 %v556_v0, %v555_v1  ;;  %v239_v54 = vunpack.c.h.bf16 %v110_v42  ;;  %v584_v1 = vsel %vm402_vm0, %v365_v55, 0.0  ;;  %v368_v4 = vmul.f32 %v240_v58, %v240_v58  ;;  %v124_v42 = vld [vmem:[%s2114_s1 + $0x1a8] sm:$0xff]   ;;  %v136_v33 = vld [vmem:[%s2114_s1 + $0x1d8] sm:$0xff]  }
  0xc9   :  { %v1143_v59 = vpop.f32.mrf.mxu1  ;;  %v370_v13 = vmul.f32 %v242_v3, %v242_v3  ;;  %v371_v18 = vmul.f32 %v243_v8, %v243_v8  ;;  %v378_v50 = vmul.f32 %v250_v39, %v250_v39  ;;  %v379_v55 = vmul.f32 %v251_v44, %v251_v44 }
  0xca   :  { %v559_v11 = vadd.f32 %v558_v5, %v557_v7  ;;  %v366_v59 = vmul.f32 %v238_v49, %v238_v49  ;;  %v367_v0 = vmul.f32 %v239_v54, %v239_v54  ;;  %v252_v49 = vunpack.c.l.bf16 %v124_v42 }
  0xcb   :  { %v253_v54 = vunpack.c.h.bf16 %v124_v42  ;;  %v254_v58 = vunpack.c.l.bf16 %v126_v52  ;;  %v255_v63 = vunpack.c.h.bf16 %v126_v52  ;;  %v256_v3 = vunpack.c.l.bf16 %v128_v61  ;;  %v138_v42 = vld [vmem:[%s2114_s1 + $0x1e0] sm:$0xff]   ;;  %v140_v52 = vld [vmem:[%s2114_s1 + $0x1e8] sm:$0xff]  }
  0xcc   :  { %v1156_v2 = vpop.f32.mrf.mxu2  ;;  %v561_v16 = vadd.f32 %v560_v10, %v559_v11  ;;  %v586_v5 = vsel %vm402_vm0, %v366_v59, 0.0  ;;  %v588_v10 = vsel %vm402_vm0, %v367_v0, 0.0  ;;  %v380_v59 = vmul.f32 %v252_v49, %v252_v49 }
  0xcd   :  { %v381_v0 = vmul.f32 %v253_v54, %v253_v54  ;;  %v257_v8 = vunpack.c.h.bf16 %v128_v61  ;;  %v259_v17 = vunpack.c.h.bf16 %v130_v6  ;;  %v261_v26 = vunpack.c.h.bf16 %v132_v15  ;;  %v142_v61 = vld [vmem:[%s2114_s1 + $0x1f0] sm:$0xff]  }
  0xce   :  { %v563_v20 = vadd.f32 %v562_v14, %v561_v16  ;;  %v590_v14 = vsel %vm402_vm0, %v368_v4, 0.0  ;;  %v382_v4 = vmul.f32 %v254_v58, %v254_v58  ;;  %v264_v39 = vunpack.c.l.bf16 %v136_v33 }
  0xcf   :  { %v265_v44 = vunpack.c.h.bf16 %v136_v33  ;;  %v266_v49 = vunpack.c.l.bf16 %v138_v42  ;;  %v267_v54 = vunpack.c.h.bf16 %v138_v42  ;;  %v268_v58 = vunpack.c.l.bf16 %v140_v52 }
  0xd0   :  { %v565_v25 = vadd.f32 %v564_v19, %v563_v20  ;;  %v592_v19 = vsel %vm402_vm0, %v369_v9, 0.0  ;;  %v383_v9 = vmul.f32 %v255_v63, %v255_v63  ;;  %v1167_v63 = vpop.f32.mrf.mxu3 }
  0xd2   :  { %v567_v29 = vadd.f32 %v566_v23, %v565_v25  ;;  %v594_v23 = vsel %vm402_vm0, %v370_v13, 0.0  ;;  %v384_v13 = vmul.f32 %v256_v3, %v256_v3 }
  0xd4   :  { %v569_v34 = vadd.f32 %v568_v28, %v567_v29  ;;  %v596_v28 = vsel %vm402_vm0, %v371_v18, 0.0  ;;  %v385_v18 = vmul.f32 %v257_v8, %v257_v8 }
  0xd6   :  { %v571_v38 = vadd.f32 %v570_v32, %v569_v34  ;;  %v598_v32 = vsel %vm402_vm0, %v372_v22, 0.0  ;;  %v386_v22 = vmul.f32 %v258_v12, %v258_v12 }
  0xd8   :  { %v573_v43 = vadd.f32 %v572_v37, %v571_v38  ;;  %v600_v37 = vsel %vm402_vm0, %v373_v27, 0.0  ;;  %v387_v27 = vmul.f32 %v259_v17, %v259_v17  ;;  %v1169_v17 = vpop.f32.mrf.mxu3 }
  0xda   :  { %v575_v48 = vadd.f32 %v574_v41, %v573_v43  ;;  %v602_v41 = vsel %vm402_vm0, %v374_v31, 0.0  ;;  %v388_v31 = vmul.f32 %v260_v21, %v260_v21 }
  0xdc   :  { %v577_v53 = vadd.f32 %v576_v47, %v575_v48  ;;  %v604_v47 = vsel %vm402_vm0, %v375_v36, 0.0  ;;  %v389_v36 = vmul.f32 %v261_v26, %v261_v26 }
  0xde   :  { %v579_v57 = vadd.f32 %v578_v51, %v577_v53  ;;  %v606_v51 = vsel %vm402_vm0, %v376_v40, 0.0  ;;  %v390_v40 = vmul.f32 %v262_v30, %v262_v30 }
  0xe0   :  { %v581_v62 = vadd.f32 %v580_v56, %v579_v57  ;;  %v608_v56 = vsel %vm402_vm0, %v377_v46, 0.0  ;;  %v391_v46 = vmul.f32 %v263_v35, %v263_v35 }
  0xe2   :  { %v583_v2 = vadd.f32 %v582_v60, %v581_v62  ;;  %v610_v60 = vsel %vm402_vm0, %v378_v50, 0.0  ;;  %v392_v50 = vmul.f32 %v264_v39, %v264_v39 }
  0xe4   :  { %v585_v7 = vadd.f32 %v584_v1, %v583_v2  ;;  %v612_v1 = vsel %vm402_vm0, %v379_v55, 0.0  ;;  %v393_v55 = vmul.f32 %v265_v44, %v265_v44  ;;  %v1171_v44 = vld [vmem:[%s2115_s2] sm:$0x1] }
  0xe6   :  { %v587_v11 = vadd.f32 %v586_v5, %v585_v7  ;;  %v614_v5 = vsel %vm402_vm0, %v380_v59, 0.0  ;;  %v394_v59 = vmul.f32 %v266_v49, %v266_v49  ;;  %v1168_v49 = vadd.f32 %v1167_v63, %v1975_v45 }
  0xe8   :  { %v589_v16 = vadd.f32 %v588_v10, %v587_v11  ;;  %v616_v10 = vsel %vm402_vm0, %v381_v0, 0.0  ;;  %v269_v0 = vunpack.c.h.bf16 %v140_v52  ;;  %v642_v6 = vsel %vm402_vm0, %v394_v59, 0.0 }
  0xea   :  { %v591_v20 = vadd.f32 %v590_v14, %v589_v16  ;;  %v618_v14 = vsel %vm402_vm0, %v382_v4, 0.0  ;;  %v270_v4 = vunpack.c.l.bf16 %v142_v61 }
  0xec   :  { %v593_v25 = vadd.f32 %v592_v19, %v591_v20  ;;  %v620_v19 = vsel %vm402_vm0, %v383_v9, 0.0  ;;  %v271_v9 = vunpack.c.h.bf16 %v142_v61 }
  0xee   :  { %v595_v29 = vadd.f32 %v594_v23, %v593_v25  ;;  %v622_v23 = vsel %vm402_vm0, %v384_v13, 0.0 }
  0xf0   :  { %v597_v34 = vadd.f32 %v596_v28, %v595_v29  ;;  %v624_v28 = vsel %vm402_vm0, %v385_v18, 0.0 }
  0xf2   :  { %v599_v38 = vadd.f32 %v598_v32, %v597_v34  ;;  %v626_v32 = vsel %vm402_vm0, %v386_v22, 0.0 }
  0xf4   :  { %v601_v43 = vadd.f32 %v600_v37, %v599_v38  ;;  %v628_v37 = vsel %vm402_vm0, %v387_v27, 0.0 }
  0xf6   :  { %v603_v48 = vadd.f32 %v602_v41, %v601_v43  ;;  %v630_v41 = vsel %vm402_vm0, %v388_v31, 0.0 }
  0xf8   :  { %v605_v53 = vadd.f32 %v604_v47, %v603_v48  ;;  %v632_v47 = vsel %vm402_vm0, %v389_v36, 0.0 }
  0xfa   :  { %v607_v57 = vadd.f32 %v606_v51, %v605_v53  ;;  %v634_v51 = vsel %vm402_vm0, %v390_v40, 0.0 }
  0xfc   :  { %v609_v62 = vadd.f32 %v608_v56, %v607_v57  ;;  %v636_v56 = vsel %vm402_vm0, %v391_v46, 0.0 }
  0xfe   :  { %v611_v2 = vadd.f32 %v610_v60, %v609_v62  ;;  %v638_v60 = vsel %vm402_vm0, %v392_v50, 0.0 }
 0x100   :  { %v613_v7 = vadd.f32 %v612_v1, %v611_v2  ;;  %v395_v1 = vmul.f32 %v267_v54, %v267_v54  ;;  %v640_v2 = vsel %vm402_vm0, %v393_v55, 0.0 }
 0x102   :  { %v615_v11 = vadd.f32 %v614_v5, %v613_v7  ;;  %v396_v5 = vmul.f32 %v268_v58, %v268_v58  ;;  %v144_v7 = vld [vmem:[%s2114_s1 + $0x1f8] sm:$0xff]  }
 0x103   :  { %v272_v13 = vunpack.c.l.bf16 %v144_v7  ;;  %v273_v18 = vunpack.c.h.bf16 %v144_v7 }
 0x104   :  { %v617_v16 = vadd.f32 %v616_v10, %v615_v11  ;;  %v397_v10 = vmul.f32 %v269_v0, %v269_v0  ;;  %v644_v11 = vsel %vm402_vm0, %v395_v1, 0.0  ;;  %v646_v15 = vsel %vm402_vm0, %v396_v5, 0.0 }
 0x105   :  { %v400_v22 = vmul.f32 %v272_v13, %v272_v13 }
 0x106   :  { %v619_v20 = vadd.f32 %v618_v14, %v617_v16  ;;  %v398_v14 = vmul.f32 %v270_v4, %v270_v4 }
 0x108   :  { %v621_v25 = vadd.f32 %v620_v19, %v619_v20  ;;  %v399_v19 = vmul.f32 %v271_v9, %v271_v9  ;;  %v648_v20 = vsel %vm402_vm0, %v397_v10, 0.0 }
 0x10a   :  { %v623_v29 = vadd.f32 %v622_v23, %v621_v25  ;;  %v650_v23 = vsel %vm402_vm0, %v398_v14, 0.0  ;;  %v401_v25 = vmul.f32 %v273_v18, %v273_v18  ;;  %v652_v26 = vsel %vm402_vm0, %v399_v19, 0.0 }
 0x10c   :  { %v625_v34 = vadd.f32 %v624_v28, %v623_v29  ;;  %v654_v28 = vsel %vm402_vm0, %v400_v22, 0.0  ;;  %v656_v30 = vsel %vm402_vm0, %v401_v25, 0.0 }
 0x10e   :  { %v627_v38 = vadd.f32 %v626_v32, %v625_v34 }
 0x110   :  { %v629_v43 = vadd.f32 %v628_v37, %v627_v38 }
 0x112   :  { %v631_v48 = vadd.f32 %v630_v41, %v629_v43 }
 0x114   :  { %v633_v53 = vadd.f32 %v632_v47, %v631_v48 }
 0x116   :  { %v635_v57 = vadd.f32 %v634_v51, %v633_v53  ;;  %v1531_v51 = vld [vmem:[%s2116_s3] ss:$0 sm:$0xff] }
 0x118   :  { %v637_v62 = vadd.f32 %v636_v56, %v635_v57 }
 0x11a   :  { %v639_v3 = vadd.f32 %v638_v60, %v637_v62 }
 0x11c   :  { %v641_v8 = vadd.f32 %v640_v2, %v639_v3 }
 0x11e   :  { %v643_v12 = vadd.f32 %v642_v6, %v641_v8 }
 0x120   :  { %v645_v16 = vadd.f32 %v644_v11, %v643_v12 }
 0x122   :  { %v647_v21 = vadd.f32 %v646_v15, %v645_v16 }
 0x124   :  { %v649_v24 = vadd.f32 %v648_v20, %v647_v21 }
 0x126   :  { %v651_v27 = vadd.f32 %v650_v23, %v649_v24 }
 0x128   :  { %v653_v29 = vadd.f32 %v652_v26, %v651_v27 }
 0x12a   :  { %v655_v31 = vadd.f32 %v654_v28, %v653_v29 }
 0x12c   :  { %v657_v32 = vadd.f32 %v656_v30, %v655_v31 }
 0x12e   :  { %v658_v33 = vrot.slane %v657_v32, 4 }
 0x130   :  { %v659_v34 = vadd.f32 %v658_v33, %v657_v32 }
 0x132   :  { %v660_v35 = vrot.slane %v659_v34, 2 }
 0x134   :  { %v661_v36 = vadd.f32 %v660_v35, %v659_v34 }
 0x136   :  { %v662_v37 = vrot.slane %v661_v36, 1 }
 0x138   :  { %v663_v38 = vadd.f32 %v662_v37, %v661_v36 }
 0x13a   :  { %1532 = vrsqrt.f32 %v663_v38  ;;  %vm1178_vm1 = vweird.f32 %v663_v38 }
 0x140   :  { %v1533_v39 = vpop.eup %1532 }
 0x141   :  { %v1173_v40 = vmul.f32 %v1533_v39, %v663_v38  ;;  %vm1179_vm2 = vweird.f32 %v1533_v39 }
 0x142   :  { %vm1180_vm3 = vmor %vm1178_vm1, %vm1179_vm2 }
 0x143   :  { %v1174_v41 = vmul.f32 %v1533_v39, %v1173_v40 }
 0x145   :  { %v1175_v42 = vmul.f32 0.5, %v1174_v41 }
 0x147   :  { %v1176_v43 = vsub.f32 1.5, %v1175_v42 }
 0x149   :  { %v1177_v46 = vmul.f32 %v1533_v39, %v1176_v43 }
 0x14b   :  { %v1181_v47 = vsel %vm1180_vm3, %v1533_v39, %v1177_v46 }
 0x14c   :  { %v1182_v48 = vmul.f32 %v1181_v47, %v1171_v44 }
 0x14e   :  { %v1184_v50 = vperm.slane %v1182_v48, 0 }
 0x150   :  { %v1186_v52 = vmul.f32 %v1184_v50, %v1168_v49 }
 0x152   :  { %v1191_v53 = vadd.f32 %v1531_v51, %v1186_v52 }
 0x154   :  { %1193 = vst.msk [vmem:[#allocation2] sm:$0x3] %vm1192_vm4, %v1191_v53 }
 0x155   :  { %1204 = dma.vmem_to_hbm [thread:$0]  %s1200_s9, 32, %s1202_s12, [#allocation3]  }
 0x156   :  { %1558 = dma.done.wait [#allocation3], 32  }
 0x157   :  { %1559 = vsyncadd [#allocation3], 4294967264 }
 0x158   :  { %1209 = vsyncpa [#allocation3], 1 }

</bundles_post_ra>
